<compile_context>
chip_gen: v6e
topology: v6e:2x2x1
jax: 0.10.0
libtpu: 0.0.40
codegen_flags: <defaults>
</compile_context>

<pallas_src>
import functools

import jax
import jax.numpy as jnp
from jax.experimental import pallas as pl
from jax.experimental.pallas import tpu as pltpu


# ----------------------------------------------------------------------------
# Kernel: whole MLP fused, one batch tile per grid step.
# ----------------------------------------------------------------------------
def _mlp_fused_kernel(x_ref, w_ref, b_ref, o_ref, *, num_layers, compute_dtype):
    """
    x_ref : [TM, Dp]      (compute_dtype; cast once in the wrapper)
    w_ref : [L, Dp, Dp]   (compute_dtype; whole stack resident in VMEM)
    b_ref : [L, 1, Dp]    (f32)
    o_ref : [TM, Dp]      (f32)
    ReLU on hidden layers, softplus (logaddexp(y, 0)) on the last layer.
    """
    h = x_ref[...]
    for layer in range(num_layers):
        w = w_ref[layer]                      # [Dp, Dp], static index -> free
        b = b_ref[layer]                      # [1, Dp], f32
        # MXU matmul with f32 accumulation; bias add + activation in f32.
        y = jnp.dot(h, w, preferred_element_type=jnp.float32) + b
        if layer < num_layers - 1:
            h = jnp.maximum(y, 0.0).astype(compute_dtype)
        else:
            h = jnp.logaddexp(y, 0.0)         # numerically stable softplus
    o_ref[...] = h.astype(o_ref.dtype)


# ----------------------------------------------------------------------------
# Helpers
# ----------------------------------------------------------------------------
def _round_up(n, m):
    return (n + m - 1) // m * m


def _pad_to(a, shape):
    pads = [(0, s - d) for d, s in zip(a.shape, shape)]
    if all(p == (0, 0) for p in pads):
        return a
    return jnp.pad(a, pads)


def _vmem_capacity_bytes():
    """Per-core VMEM capacity; conservative 64 MiB (v7x) fallback."""
    try:
        return int(pltpu.get_tpu_info().vmem_capacity_bytes)
    except Exception:
        return 64 * 1024 * 1024


# ----------------------------------------------------------------------------
# Wrapper
# ----------------------------------------------------------------------------
def mlp_std_forward(x, params, *, tile_m=None, compute_dtype=jnp.float32,
                    lane=128):
    """Forward pass of MLP_std: ReLU on all layers except last, Softplus last.

    x       : [B, dims[0]] float32
    params  : list of (W [din, dout], b [dout]) float32 (pre-transposed)
    lane    : feature-dim padding multiple. 128 is MXU-native on v5e and
              cheapest for toy widths; use 256 for non-toy widths on v6e/v7x
              to keep their 256x256 MXUs fully occupied.
    Returns : [B, dims[-1]] float32
    """
    num_layers = len(params)
    batch, d0 = x.shape
    d_last = params[-1][0].shape[1]

    # One common padded feature width for all layers so params can be stacked.
    dims = [d0] + [w.shape[1] for (w, _) in params]
    dmaxp = _round_up(max(dims), lane)

    # Stack zero-padded weights/biases: [L, Dp, Dp] and [L, 1, Dp].
    w_stacked = jnp.stack([_pad_to(w, (dmaxp, dmaxp)) for (w, _) in params])
    b_stacked = jnp.stack(
        [_pad_to(b.reshape(1, -1), (1, dmaxp)) for (_, b) in params])

    # Cast once in the wrapper (not per grid step inside the kernel).
    w_stacked = w_stacked.astype(compute_dtype)
    b_stacked = b_stacked.astype(jnp.float32)
    io_itemsize = jnp.dtype(compute_dtype).itemsize

    # ---- batch tiling -------------------------------------------------------
    batch8 = _round_up(batch, 8)
    if tile_m is None:
        if batch8 < 16:
            tile_m = batch8                       # single tiny tile
        else:
            # Exactly 2 big grid steps: amortizes the ~0.35us/step pipeline
            # overhead while keeping grid_m == 2 so the "parallel" axis still
            # shards across both TensorCores on v7x.
            tile_m = min(2048, _round_up((batch8 + 1) // 2, 8))
    else:
        tile_m = min(_round_up(tile_m, 8), batch8)

    # Respect the VMEM budget: x/out double buffers must fit comfortably.
    vmem_cap = _vmem_capacity_bytes()
    io_budget = int(0.375 * vmem_cap)             # half of the ~75% scoped cap
    while tile_m > 8 and 2 * tile_m * dmaxp * (io_itemsize + 4) > io_budget:
        tile_m = max(8, _round_up(tile_m // 2, 8))

    grid_m = pl.cdiv(batch8, tile_m)
    batch_p = grid_m * tile_m
    x_p = _pad_to(x, (batch_p, dmaxp)).astype(compute_dtype)

    # ---- VMEM limit (derived, capped per-generation) ------------------------
    xout_bytes = 2 * tile_m * dmaxp * (io_itemsize + 4)   # double-buffered x+o
    w_bytes = w_stacked.size * io_itemsize                # single-buffered
    b_bytes = num_layers * 8 * dmaxp * 4                  # sublane-padded bias
    vmem_need = xout_bytes + w_bytes + b_bytes
    vmem_limit = int(min(max(2 * vmem_need + (8 << 20), 16 << 20),
                         int(0.75 * vmem_cap)))

    # ---- scheduler hints -----------------------------------------------------
    flops = 2 * batch_p * dmaxp * dmaxp * num_layers
    transcendentals = 2 * batch_p * dmaxp          # exp + log1p per softplus
    bytes_accessed = (batch_p * dmaxp * io_itemsize        # x
                      + batch_p * dmaxp * 4                # out
                      + w_stacked.size * io_itemsize       # weights
                      + b_stacked.size * 4)                # biases
    cost = pl.CostEstimate(flops=flops, transcendentals=transcendentals,
                           bytes_accessed=bytes_accessed)

    kernel = functools.partial(_mlp_fused_kernel,
                               num_layers=num_layers,
                               compute_dtype=compute_dtype)

    out_p = pl.pallas_call(
        kernel,
        out_shape=jax.ShapeDtypeStruct((batch_p, dmaxp), jnp.float32),
        grid=(grid_m,),
        in_specs=[
            # Batch-tiled activations (double-buffered by the pipeline).
            pl.BlockSpec((tile_m, dmaxp), lambda i: (i, 0)),
            # Grid-invariant params: whole arrays resident in VMEM,
            # single-buffered (no per-step re-DMA / no double buffering).
            pl.BlockSpec(memory_space=pltpu.MemorySpace.VMEM),
            pl.BlockSpec(memory_space=pltpu.MemorySpace.VMEM),
        ],
        out_specs=pl.BlockSpec((tile_m, dmaxp), lambda i: (i, 0)),
        compiler_params=pltpu.CompilerParams(
            dimension_semantics=("parallel",),
            vmem_limit_bytes=vmem_limit,
        ),
        cost_estimate=cost,
    )(x_p, w_stacked, b_stacked)

    return out_p[:batch, :d_last]


# TODO(synk): for wide layers where the stacked padded weights no longer fit
# the VMEM budget (threshold is half as large on v7x's 64 MiB), add an
# output-feature (N) tile axis and a trailing "arbitrary" K-reduction axis
# with an f32 VMEM accumulator instead of whole-weight residency.


# ----------------------------------------------------------------------------
# Parameter init mirroring MLP_std.initialize()
# ----------------------------------------------------------------------------
def init_mlp_std_params(key, dimensions):
    """Layer 0 weight ~ N(0,1), later weights Xavier-uniform, biases from the
    default PyTorch Linear init U(-1/sqrt(fan_in), 1/sqrt(fan_in)).
    Weights are returned pre-transposed as [in, out]."""
    params = []
    for i in range(len(dimensions) - 1):
        fan_in, fan_out = dimensions[i], dimensions[i + 1]
        key, kw, kb = jax.random.split(key, 3)
        if i == 0:
            w = jax.random.normal(kw, (fan_in, fan_out), dtype=jnp.float32)
        else:
            limit = (6.0 / (fan_in + fan_out)) ** 0.5  # xavier_uniform
            w = jax.random.uniform(
                kw, (fan_in, fan_out), minval=-limit, maxval=limit,
                dtype=jnp.float32)
        b_bound = 1.0 / (fan_in ** 0.5)
        b = jax.random.uniform(
            kb, (fan_out,), minval=-b_bound, maxval=b_bound, dtype=jnp.float32)
        params.append((w, b))
    return params


def mlp_std_reference(x, params):
    """Pure-JAX reference for correctness checking."""
    for (w, b) in params[:-1]:
        x = jax.nn.relu(x @ w + b)
    w, b = params[-1]
    return jax.nn.softplus(x @ w + b)


if __name__ == "__main__":
    key = jax.random.PRNGKey(0)
    dimensions = [16, 32, 32, 8]   # MLP_std(dimensions=[16, 32, 32, 8])
    batch = 256

    key, kx = jax.random.split(key)
    x = jax.random.normal(kx, (batch, dimensions[0]), dtype=jnp.float32)
    params = init_mlp_std_params(key, dimensions)

    ref = mlp_std_reference(x, params)

    # f32 compute path (auto tile -> 2 grid steps): exact match w/ reference.
    out = mlp_std_forward(x, params, compute_dtype=jnp.float32)
    out = jax.block_until_ready(out)
    assert out.shape == (batch, dimensions[-1])
    assert jnp.allclose(out, ref, atol=1e-5, rtol=1e-5)

    # bf16 compute / f32 accumulate path (weights+x cast once in the wrapper):
    # loose-tolerance comparison against the f32 reference.
    out_bf16 = mlp_std_forward(x, params, compute_dtype=jnp.bfloat16)
    out_bf16 = jax.block_until_ready(out_bf16)
    assert out_bf16.shape == (batch, dimensions[-1])
    assert bool(jnp.all(jnp.isfinite(out_bf16)))
    rel_err = jnp.max(jnp.abs(out_bf16 - ref) / (jnp.abs(ref) + 1.0))
    assert float(rel_err) < 0.1, f"bf16 path rel err too large: {rel_err}"

    # Explicit-tile path (exercises batch padding / multi-step grid).
    out_t = mlp_std_forward(x, params, tile_m=64, compute_dtype=jnp.float32)
    out_t = jax.block_until_ready(out_t)
    assert jnp.allclose(out_t, ref, atol=1e-5, rtol=1e-5)

    print("KERNEL_OK")
</pallas_src>

<mosaic_0001>
module attributes {stable_mosaic.version = 11 : i64} {
  func.func @_mlp_fused_kernel(%arg0: i32, %arg1: memref<128x128xf32, #tpu.memory_space<vmem>>, %arg2: memref<3x128x128xf32, #tpu.memory_space<vmem>>, %arg3: memref<3x1x128xf32, #tpu.memory_space<vmem>>, %arg4: memref<128x128xf32, #tpu.memory_space<vmem>>) attributes {dimension_semantics = [#tpu.dimension_semantics<parallel>], iteration_bounds = array<i64: 2>, scalar_prefetch = 0 : i64, scratch_operands = 0 : i64, tpu.core_type = #tpu.core_type<tc>, window_params = [{transform_indices = @transform_0, window_bounds = array<i64: 128, 128>}, {pipeline_mode = #tpu.pipeline_mode<synchronous>, transform_indices = @transform_1, window_bounds = array<i64: 3, 128, 128>}, {pipeline_mode = #tpu.pipeline_mode<synchronous>, transform_indices = @transform_2, window_bounds = array<i64: 3, 1, 128>}, {transform_indices = @transform_3, window_bounds = array<i64: 128, 128>}]} {
    %c0 = arith.constant 0 : index
    %c0_0 = arith.constant 0 : index
    %0 = vector.load %arg1[%c0, %c0_0] : memref<128x128xf32, #tpu.memory_space<vmem>>, vector<128x128xf32>
    %c0_1 = arith.constant 0 : index
    %c0_2 = arith.constant 0 : index
    %c0_3 = arith.constant 0 : index
    %1 = vector.load %arg2[%c0_1, %c0_2, %c0_3] : memref<3x128x128xf32, #tpu.memory_space<vmem>>, vector<1x128x128xf32>
    %2 = vector.shape_cast %1 : vector<1x128x128xf32> to vector<128x128xf32>
    %c0_4 = arith.constant 0 : index
    %c0_5 = arith.constant 0 : index
    %c0_6 = arith.constant 0 : index
    %3 = vector.load %arg3[%c0_4, %c0_5, %c0_6] : memref<3x1x128xf32, #tpu.memory_space<vmem>>, vector<1x1x128xf32>
    %4 = vector.shape_cast %3 : vector<1x1x128xf32> to vector<1x128xf32>
    %cst = arith.constant dense<0.000000e+00> : vector<128x128xf32>
    %5 = tpu.matmul %0, %2, %cst {dimension_numbers = #tpu.dot_dimension_numbers<[1], [0], [0], [1], [0, 0, 1, 1], [], []>} : vector<128x128xf32>, vector<128x128xf32>, vector<128x128xf32> -> vector<128x128xf32>
    %6 = vector.broadcast %4 : vector<1x128xf32> to vector<128x128xf32>
    %7 = arith.addf %5, %6 : vector<128x128xf32>
    %cst_7 = arith.constant 0.000000e+00 : f32
    %8 = vector.broadcast %cst_7 : f32 to vector<128x128xf32>
    %9 = arith.maximumf %7, %8 : vector<128x128xf32>
    %c1 = arith.constant 1 : index
    %c0_8 = arith.constant 0 : index
    %c0_9 = arith.constant 0 : index
    %10 = vector.load %arg2[%c1, %c0_8, %c0_9] : memref<3x128x128xf32, #tpu.memory_space<vmem>>, vector<1x128x128xf32>
    %11 = vector.shape_cast %10 : vector<1x128x128xf32> to vector<128x128xf32>
    %c1_10 = arith.constant 1 : index
    %c0_11 = arith.constant 0 : index
    %c0_12 = arith.constant 0 : index
    %12 = vector.load %arg3[%c1_10, %c0_11, %c0_12] : memref<3x1x128xf32, #tpu.memory_space<vmem>>, vector<1x1x128xf32>
    %13 = vector.shape_cast %12 : vector<1x1x128xf32> to vector<1x128xf32>
    %cst_13 = arith.constant dense<0.000000e+00> : vector<128x128xf32>
    %14 = tpu.matmul %9, %11, %cst_13 {dimension_numbers = #tpu.dot_dimension_numbers<[1], [0], [0], [1], [0, 0, 1, 1], [], []>} : vector<128x128xf32>, vector<128x128xf32>, vector<128x128xf32> -> vector<128x128xf32>
    %15 = vector.broadcast %13 : vector<1x128xf32> to vector<128x128xf32>
    %16 = arith.addf %14, %15 : vector<128x128xf32>
    %cst_14 = arith.constant 0.000000e+00 : f32
    %17 = vector.broadcast %cst_14 : f32 to vector<128x128xf32>
    %18 = arith.maximumf %16, %17 : vector<128x128xf32>
    %c2 = arith.constant 2 : index
    %c0_15 = arith.constant 0 : index
    %c0_16 = arith.constant 0 : index
    %19 = vector.load %arg2[%c2, %c0_15, %c0_16] : memref<3x128x128xf32, #tpu.memory_space<vmem>>, vector<1x128x128xf32>
    %20 = vector.shape_cast %19 : vector<1x128x128xf32> to vector<128x128xf32>
    %c2_17 = arith.constant 2 : index
    %c0_18 = arith.constant 0 : index
    %c0_19 = arith.constant 0 : index
    %21 = vector.load %arg3[%c2_17, %c0_18, %c0_19] : memref<3x1x128xf32, #tpu.memory_space<vmem>>, vector<1x1x128xf32>
    %22 = vector.shape_cast %21 : vector<1x1x128xf32> to vector<1x128xf32>
    %cst_20 = arith.constant dense<0.000000e+00> : vector<128x128xf32>
    %23 = tpu.matmul %18, %20, %cst_20 {dimension_numbers = #tpu.dot_dimension_numbers<[1], [0], [0], [1], [0, 0, 1, 1], [], []>} : vector<128x128xf32>, vector<128x128xf32>, vector<128x128xf32> -> vector<128x128xf32>
    %24 = vector.broadcast %22 : vector<1x128xf32> to vector<128x128xf32>
    %25 = arith.addf %23, %24 : vector<128x128xf32>
    %cst_21 = arith.constant 0.000000e+00 : f32
    %26 = vector.broadcast %cst_21 : f32 to vector<128x128xf32>
    %27 = arith.maximumf %25, %26 : vector<128x128xf32>
    %28 = vector.broadcast %cst_21 : f32 to vector<128x128xf32>
    %29 = arith.subf %25, %28 : vector<128x128xf32>
    %30 = arith.cmpf one, %29, %29 : vector<128x128xf32>
    %31 = vector.broadcast %cst_21 : f32 to vector<128x128xf32>
    %32 = arith.addf %25, %31 : vector<128x128xf32>
    %33 = math.absf %29 : vector<128x128xf32>
    %cst_22 = arith.constant 0.000000e+00 : f32
    %34 = vector.broadcast %cst_22 : f32 to vector<128x128xf32>
    %35 = arith.subf %34, %33 : vector<128x128xf32>
    %36 = math.exp %35 : vector<128x128xf32>
    %37 = math.log1p %36 : vector<128x128xf32>
    %38 = arith.addf %27, %37 : vector<128x128xf32>
    %39 = arith.select %30, %32, %38 : vector<128x128xi1>, vector<128x128xf32>
    %c0_23 = arith.constant 0 : index
    %c0_24 = arith.constant 0 : index
    %40 = vector.load %arg4[%c0_23, %c0_24] : memref<128x128xf32, #tpu.memory_space<vmem>>, vector<128x128xf32>
    tpu.vector_store %arg4[%c0_23, %c0_24], %39 {strides = array<i32>} : memref<128x128xf32, #tpu.memory_space<vmem>>, vector<128x128xf32>,
    return
  }
  func.func @transform_0(%arg0: i32) -> (i32, i32) {
    %c0_i32 = arith.constant 0 : i32
    %c0_i32_0 = arith.constant 0 : i32
    return %arg0, %c0_i32 : i32, i32
  }
  func.func @transform_1(%arg0: i32) -> (i32, i32, i32) {
    %c0_i32 = arith.constant 0 : i32
    %c0_i32_0 = arith.constant 0 : i32
    %c0_i32_1 = arith.constant 0 : i32
    %c0_i32_2 = arith.constant 0 : i32
    return %c0_i32, %c0_i32_0, %c0_i32_1 : i32, i32, i32
  }
  func.func @transform_2(%arg0: i32) -> (i32, i32, i32) {
    %c0_i32 = arith.constant 0 : i32
    %c0_i32_0 = arith.constant 0 : i32
    %c0_i32_1 = arith.constant 0 : i32
    %c0_i32_2 = arith.constant 0 : i32
    return %c0_i32, %c0_i32_0, %c0_i32_1 : i32, i32, i32
  }
  func.func @transform_3(%arg0: i32) -> (i32, i32) {
    %c0_i32 = arith.constant 0 : i32
    %c0_i32_0 = arith.constant 0 : i32
    return %arg0, %c0_i32 : i32, i32
  }
}

</mosaic_0001>

<bundles_post_ra>
// kernel: tpu_custom_call.1
= control target key start
LH: loop header
LB: loop body
LE: loop exit
PB: predicated region body
PF: predicated region fallthrough
CT: control target
= control target key end

     0   :  { %8 = vsyncpa [#allocation3], 0  ;;  %s2326_s0 = inlined_call_operand.hbm [shape: f32[256,128], index: 0, kind: input, shape index: {}]   ;;  %s2327_s1 = inlined_call_operand.hbm [shape: f32[3,128,128], index: 1, kind: input, shape index: {}]   ;;  %s2328_s2 = inlined_call_operand.vmem [shape: f32[3,1,128], index: 2, kind: input, shape index: {}]   ;;  %s2329_s3 = inlined_call_operand.hbm [shape: f32[256,128], index: 3, kind: output, shape index: {}]  }
   0x1   :  { %10 = vsyncpa [#allocation3 + $0x1], 0 }
   0x2   :  { %11 = vsyncpa [#allocation6], 0 }
   0x3   :  { %12 = vsyncpa [#allocation4], 0 }
   0x4   :  { %14 = vsyncpa [#allocation4 + $0x1], 0  ;;  %s1758_s12 = smov 0   ;;  %s1760_s13 = smov 0  }
   0x5   :  { %s1762_s14 = smov 0   ;;  %s1764_s15 = smov 0  }
   0x6 LB: > { %s1779_s16 = sadd.s32 4294967295, %s1729_s15   ;;  %s1163_s17 = sadd.s32 4294967294, %s1729_s15   ;;  %s1729_s15 = sphi %s1764_s15, %s2367_s15   ;;  %s1725_s14 = sphi %s1762_s14, %s2366_s14   ;;  %s1721_s13 = sphi %s1760_s13, %s2365_s13   ;;  %s1717_s12 = sphi %s1758_s12, %s2364_s12  }
   0x7   : > { %p40_p0 = scmp.ne.s32.totalorder %s1721_s13, %s1717_s12  ;;  %p2330_p1 = scmp.eq.s32.totalorder %s1779_s16, 0 }
   0x8   : > { %p112_p3 = scmp.eq.s32.totalorder %s1163_s17, 1  ;;  %p1164_p5 = scmp.ge.s32.totalorder %s1729_s15, 1 }
   0x9   : > { %p1788_p4 = por %p2330_p1, %p40_p0  ;;  %p119_p7 = scmp.lt.s32.totalorder %s1729_s15, 3 }
   0xa   : > { %p1793_p6 = por %p112_p3, %p40_p0  ;;  %s1731_s21 = smov [#allocation5]  }
   0xb   : > { %s2334_s18 = scalar_select %p1788_p4, 1, 0 }
   0xc   : > { %s2335_s19 = scalar_select %p1793_p6, 1, 0 }
   0xd   : > { %p1798_p8 = pnand %p1164_p5, %p119_p7  ;;  %s131_s22 = sshll.u32 %s1731_s21, 4  ;;  %s132_s22 = int_to_ptr.vmem [resolvable:$true] %s131_s22 }
   0xe   : > { %s1812_s24 = sadd.s32 1, %s1729_s15   ;;  %s27_s25 = sadd.s32 1, %s1725_s14 }
   0xf   : > { %s2336_s20 = scalar_select %p1798_p8, 1, 0 }
  0x10   : > { %p1490_p9 = pneg %p1798_p8  ;;  %s24_s26 = ssub.s32 %s1729_s15, %s1812_s24 }
  0x11   : > { %s1618_s27 = scalar_lea.vmem %s132_s22, 6144  ;;  %p1626_p5 = scmp.lt.s32.totalorder %s132_s22, %s132_s22 }
  0x12   : > { %p1807_p11 = pnand %p1490_p9, %p2330_p1  ;;  %p1619_p13 = scmp.ne.s32.totalorder %s132_s22, %s1618_s27 }
  0x13   : > { %p1627_p7 = scmp.lt.s32.totalorder %s1618_s27, %s1618_s27 }
  0x14   : > { %p1609_p12 = pneg %p1807_p11 }
  0x15   : > { %p1628_p10 = por %p1627_p7, %p1626_p5 }
  0x16   : > { %p1621_p0 = pnand %p1619_p13, %p1609_p12 }
  0x18   : > { %p1622_p3 = pneg %p1621_p0 }
  0x1a   : > { %p1629_p2 = pnand %p1628_p10, %p1622_p3 }
  0x1c   : > { %1632 = shalt.err (!%p1629_p2)
}
  0x1d   : > { %s1732_s28 = smov 128   ;;  %s1733_s29 = smov 8  }
  0x1e   : > { %1493 = dma.hbm_to_vmem [thread:$0]  (!%p1807_p11), %s2327_s1, 6144, %s132_s22, [#allocation6], %s1732_s28, %s1732_s28, %s1733_s29  }
  0x1f   : > { %p25_p2 = scmp.eq.s32.totalorder %s24_s26, 0  ;;  %p34_p9 = scmp.ne.s32.totalorder %s1725_s14, %s1721_s13 }
  0x20   : > { %p35_p10 = scmp.eq.s32.totalorder %s1729_s15, 0  ;;  %p1503_p12 = scmp.lt.s32.totalorder %s1729_s15, 2 }
  0x21   : > { %s1832_s5 = scalar_select %p25_p2, %s1725_s14, %s27_s25  }
  0x22   : > { %p36_p13 = por %p35_p10, %p34_p9  ;;  %p2338_p0 = scmp.eq.s32.totalorder %s1779_s16, 1 }
  0x23   : > { %s148_s7 = sand.u32 1, %s1725_s14   ;;  %s1184_s8 = sshll.u32 %s1729_s15, 11 }
  0x24   : > { %p1836_p3 = por %p2338_p0, %p34_p9  ;;  %s1167_s9 = sshll.u32 %s148_s7, 7 }
  0x25   : > { %s1845_s17 = scalar_lea.hbm %s2326_s0, %s1184_s8  ;;  %s152_s21 = scalar_lea.vmem [#allocation2], %s1167_s9 }
  0x26   : > { %s2339_s6 = scalar_select %p1836_p3, 1, 0 }
  0x27   : > { %s159_s22 = sshll.u32 %s152_s21, 4  ;;  %p1847_p11 = pnand %p1503_p12, %p36_p13  ;;  %s1851_s22 = int_to_ptr.vmem [resolvable:$true] %s159_s22 }
  0x28   : > { %s1853_s25 = scalar_lea.sflag [#allocation3], %s148_s7  ;;  %s1633_s26 = scalar_lea.hbm %s1845_s17, 2048 }
  0x29   : > { %p1634_p5 = scmp.ne.s32.totalorder %s1845_s17, %s1633_s26  ;;  %p1635_p7 = pneg %p1847_p11 }
  0x2a   : > { %s1638_s4 = scalar_lea.hbm %s2326_s0, 4096  ;;  %p1639_p10 = scmp.lt.s32.totalorder %s1845_s17, %s2326_s0 }
  0x2b   : > { %p1636_p2 = pnand %p1635_p7, %p1634_p5  ;;  %p1640_p12 = scmp.lt.s32.totalorder %s1638_s4, %s1633_s26 }
  0x2d   : > { %p1637_p9 = pneg %p1636_p2  ;;  %p1641_p13 = por %p1640_p12, %p1639_p10 }
  0x2f   : > { %p1642_p0 = pnand %p1641_p13, %p1637_p9 }
  0x31   : > { %1645 = shalt.err (!%p1642_p0)
}
  0x32   : > { %s1646_s7 = scalar_lea.vmem %s1851_s22, 2048  ;;  %s1734_s10 = smov [#allocation2]  }
  0x33   : > { %p1647_p1 = scmp.ne.s32.totalorder %s1851_s22, %s1646_s7  ;;  %s1651_s11 = sshll.u32 %s1734_s10, 4  ;;  %s1652_s11 = int_to_ptr.vmem [resolvable:$false] %s1651_s11 }
  0x34   : > { %s1653_s21 = scalar_lea.vmem %s1652_s11, 4096  ;;  %p1654_p2 = scmp.lt.s32.totalorder %s1851_s22, %s1652_s11 }
  0x35   : > { %p1649_p6 = pnand %p1647_p1, %p1635_p7  ;;  %p1655_p3 = scmp.lt.s32.totalorder %s1653_s21, %s1646_s7 }
  0x37   : > { %p1650_p5 = pneg %p1649_p6  ;;  %p1656_p4 = por %p1655_p3, %p1654_p2 }
  0x39   : > { %p1657_p8 = pnand %p1656_p4, %p1650_p5 }
  0x3b   : > { %1660 = shalt.err (!%p1657_p8)
}
  0x3c   : > { %1497 = dma.hbm_to_vmem [thread:$0]  (!%p1847_p11), %s1845_s17, 2048, %s1851_s22, %s1853_s25, %s1732_s28, %s1732_s28, %s1733_s29  }
  0x3d   : > { %p2341_p1 = scmp.ne.s32.totalorder %s2336_s20, 0 }
  0x3e   : > { %s1880_s26 = sand.u32 (!%p2341_p1), 1, %s1721_s13   ;;  %p2342_p4 = scmp.ne.s32.totalorder (!%p2341_p1), %s2334_s18, 0 }
  0x3f   : > { %171 = sbr.rel (%p2341_p1) target bundleno = 812 (0x32c), region = 32  ;;  %s1171_s27 = sshll.u32 (!%p2341_p1), %s1880_s26, 7 }
  0x40   : > { %s174_s30 = scalar_lea.sflag (!%p2341_p1), [#allocation3], %s1880_s26  ;;  %s1886_s23 = scalar_lea.vmem (!%p2341_p1), [#allocation2], %s1171_s27 }
  0x44   : > { %1704 = dma.done.wait (%p2342_p4), %s174_s30, 2048  }
  0x45   : > { %1706 = vsyncadd (%p2342_p4), %s174_s30, 4294965248  ;;  %p2343_p6 = scmp.eq.s32.totalorder %s1779_s16, 0 }
  0x47   : > { %1708 = dma.done.wait (%p2343_p6), [#allocation6], 6144   ;;  %p2344_p8 = pmov %p2343_p6 }
  0x48   : > { %v237_v0 = vld [vmem:[#allocation5 + $0x78] sm:$0xff]  ;;  %v236_v1 = vld [vmem:[#allocation5 + $0x70] sm:$0xff]  ;;  %v235_v2 = vld [vmem:[#allocation5 + $0x68] sm:$0xff]  ;;  %s2110_s25 = scalar_lea.vmem [#allocation7], %s1171_s27  ;;  %s1185_s4 = sshll.u32 %s1779_s16, 11 }
  0x49   : > { %1710 = vsyncadd (%p2344_p8), [#allocation6], 4294961152  ;;  %1282 = vmatprep.subr.mxu0 %v237_v0  ;;  %v234_v3 = vld [vmem:[#allocation5 + $0x60] sm:$0xff]  ;;  %v233_v5 = vld [vmem:[#allocation5 + $0x58] sm:$0xff]  ;;  %s1080_s8 = sshll.u32 %s2110_s25, 4  ;;  %s2276_s10 = scalar_lea.hbm %s2329_s3, %s1185_s4  ;;  %s2278_s8 = int_to_ptr.vmem [resolvable:$true] %s1080_s8 }
  0x4a   : > { %1283 = vmatpush3.msra.mxu0 %v237_v0  ;;  %v206_v4 = vld [vmem:[%s1886_s23] sm:$0xff]  ;;  %v232_v6 = vld [vmem:[#allocation5 + $0x50] sm:$0xff]  ;;  %v231_v7 = vld [vmem:[#allocation5 + $0x48] sm:$0xff]  ;;  %s1067_s16 = scalar_lea.sflag [#allocation4], %s1880_s26  ;;  %s1661_s11 = scalar_lea.vmem %s2278_s8, 2048 }
  0x4b   : > { %1284 = vmatprep.subr.mxu0 %v236_v1  ;;  %1314 = vmatprep.mubr.f32.mxu0 %v206_v4  ;;  %v422_v8 = vld [vmem:[#allocation5 + $0xf8] sm:$0xff]  ;;  %v421_v9 = vld [vmem:[#allocation5 + $0xf0] sm:$0xff]  ;;  %v230_v10 = vld [vmem:[#allocation5 + $0x40] sm:$0xff]  ;;  %p1662_p3 = scmp.ne.s32.totalorder %s2278_s8, %s1661_s11  ;;  %p2361_p11 = scmp.ne.s32.totalorder %s2339_s6, 0 }
  0x4c   : > { %1285 = vmatpush3.msra.mxu0 %v236_v1  ;;  %1338 = vmatprep.subr.mxu1 %v422_v8  ;;  %v420_v11 = vld [vmem:[#allocation5 + $0xe8] sm:$0xff]  ;;  %v229_v12 = vld [vmem:[#allocation5 + $0x38] sm:$0xff]  ;;  %v419_v13 = vld [vmem:[#allocation5 + $0xe0] sm:$0xff]  ;;  %s1735_s21 = smov [#allocation7]  }
  0x4d   : > { %1286 = vmatprep.subr.mxu0 %v235_v2  ;;  %1339 = vmatpush3.msra.mxu1 %v422_v8  ;;  %v228_v14 = vld [vmem:[#allocation5 + $0x30] sm:$0xff]  ;;  %v418_v15 = vld [vmem:[#allocation5 + $0xd8] sm:$0xff]  ;;  %v227_v16 = vld [vmem:[#allocation5 + $0x28] sm:$0xff]  ;;  %p1663_p7 = pnand %p1662_p3, %p2361_p11  ;;  %s1665_s27 = sshll.u32 %s1735_s21, 4  ;;  %s1666_s27 = int_to_ptr.vmem [resolvable:$false] %s1665_s27 }
  0x4e   : > { %1287 = vmatpush3.msra.mxu0 %v235_v2  ;;  %1340 = vmatprep.subr.mxu1 %v421_v9  ;;  %v417_v17 = vld [vmem:[#allocation5 + $0xd0] sm:$0xff]  ;;  %v226_v18 = vld [vmem:[#allocation5 + $0x20] sm:$0xff]  ;;  %v416_v19 = vld [vmem:[#allocation5 + $0xc8] sm:$0xff]  ;;  %s1667_s30 = scalar_lea.vmem %s1666_s27, 4096  ;;  %p1668_p10 = scmp.lt.s32.totalorder %s2278_s8, %s1666_s27 }
  0x4f   : > { %1288 = vmatprep.subr.mxu0 %v234_v3  ;;  %1341 = vmatpush3.msra.mxu1 %v421_v9  ;;  %v225_v20 = vld [vmem:[#allocation5 + $0x18] sm:$0xff]  ;;  %v415_v21 = vld [vmem:[#allocation5 + $0xc0] sm:$0xff]  ;;  %v224_v22 = vld [vmem:[#allocation5 + $0x10] sm:$0xff]  ;;  %p1664_p9 = pneg %p1663_p7  ;;  %p1669_p12 = scmp.lt.s32.totalorder %s1667_s30, %s1661_s11 }
  0x50   : > { %1289 = vmatpush3.msra.mxu0 %v234_v3  ;;  %1342 = vmatprep.subr.mxu1 %v420_v11  ;;  %v414_v23 = vld [vmem:[#allocation5 + $0xb8] sm:$0xff]  ;;  %v223_v24 = vld [vmem:[#allocation5 + $0x8] sm:$0xff]  ;;  %v413_v25 = vld [vmem:[#allocation5 + $0xb0] sm:$0xff] }
  0x51   : > { %1290 = vmatprep.subr.mxu0 %v233_v5  ;;  %1343 = vmatpush3.msra.mxu1 %v420_v11  ;;  %v222_v26 = vld [vmem:[#allocation5] sm:$0xff]  ;;  %v412_v27 = vld [vmem:[#allocation5 + $0xa8] sm:$0xff]  ;;  %v208_v30 = vld [vmem:[%s1886_s23 + $0x10] sm:$0xff]  ;;  %p1670_p13 = por %p1669_p12, %p1668_p10 }
  0x52   : > { %1291 = vmatpush3.msra.mxu0 %v233_v5  ;;  %1344 = vmatprep.subr.mxu1 %v419_v13  ;;  %v207_v28 = vld [vmem:[%s1886_s23 + $0x8] sm:$0xff]  ;;  %v411_v29 = vld [vmem:[#allocation5 + $0xa0] sm:$0xff]  ;;  %v209_v31 = vld [vmem:[%s1886_s23 + $0x18] sm:$0xff] }
  0x53   : > { %1292 = vmatprep.subr.mxu0 %v232_v6  ;;  %1345 = vmatpush3.msra.mxu1 %v419_v13  ;;  %v210_v32 = vld [vmem:[%s1886_s23 + $0x20] sm:$0xff]  ;;  %v211_v33 = vld [vmem:[%s1886_s23 + $0x28] sm:$0xff]  ;;  %v212_v34 = vld [vmem:[%s1886_s23 + $0x30] sm:$0xff]  ;;  %p1671_p0 = pnand %p1670_p13, %p1664_p9 }
  0x54   : > { %1293 = vmatpush3.msra.mxu0 %v232_v6  ;;  %1346 = vmatprep.subr.mxu1 %v418_v15  ;;  %v213_v35 = vld [vmem:[%s1886_s23 + $0x38] sm:$0xff]  ;;  %v214_v36 = vld [vmem:[%s1886_s23 + $0x40] sm:$0xff]  ;;  %v215_v37 = vld [vmem:[%s1886_s23 + $0x48] sm:$0xff] }
  0x55   : > { %1294 = vmatprep.subr.mxu0 %v231_v7  ;;  %1347 = vmatpush3.msra.mxu1 %v418_v15  ;;  %v216_v38 = vld [vmem:[%s1886_s23 + $0x50] sm:$0xff]  ;;  %v217_v39 = vld [vmem:[%s1886_s23 + $0x58] sm:$0xff]  ;;  %v218_v40 = vld [vmem:[%s1886_s23 + $0x60] sm:$0xff] }
  0x56   : > { %1295 = vmatpush3.msra.mxu0 %v231_v7  ;;  %1348 = vmatprep.subr.mxu1 %v417_v17  ;;  %v219_v41 = vld [vmem:[%s1886_s23 + $0x68] sm:$0xff]  ;;  %v220_v42 = vld [vmem:[%s1886_s23 + $0x70] sm:$0xff]  ;;  %v221_v43 = vld [vmem:[%s1886_s23 + $0x78] sm:$0xff] }
  0x57   : > { %1296 = vmatprep.subr.mxu0 %v230_v10  ;;  %1349 = vmatpush3.msra.mxu1 %v417_v17  ;;  %v410_v44 = vld [vmem:[#allocation5 + $0x98] sm:$0xff]  ;;  %v409_v45 = vld [vmem:[#allocation5 + $0x90] sm:$0xff]  ;;  %v408_v46 = vld [vmem:[#allocation5 + $0x88] sm:$0xff] }
  0x58   : > { %1297 = vmatpush3.msra.mxu0 %v230_v10  ;;  %1350 = vmatprep.subr.mxu1 %v416_v19  ;;  %v407_v47 = vld [vmem:[#allocation5 + $0x80] sm:$0xff]  ;;  %v608_v48 = vld [vmem:[#allocation5 + $0x178] sm:$0xff]  ;;  %v607_v49 = vld [vmem:[#allocation5 + $0x170] sm:$0xff] }
  0x59   : > { %1298 = vmatprep.subr.mxu0 %v229_v12  ;;  %1351 = vmatpush3.msra.mxu1 %v416_v19  ;;  %v606_v50 = vld [vmem:[#allocation5 + $0x168] sm:$0xff]  ;;  %v605_v51 = vld [vmem:[#allocation5 + $0x160] sm:$0xff]  ;;  %v1912_v52 = vld [vmem:[#allocation5 + $0x158] sm:$0xff] }
  0x5a   : > { %1299 = vmatpush3.msra.mxu0 %v229_v12  ;;  %1352 = vmatprep.subr.mxu1 %v415_v21  ;;  %v1914_v53 = vld [vmem:[#allocation5 + $0x150] sm:$0xff]  ;;  %v1918_v54 = vld [vmem:[#allocation5 + $0x148] sm:$0xff]  ;;  %v1922_v55 = vld [vmem:[#allocation5 + $0x140] sm:$0xff] }
  0x5b   : > { %1300 = vmatprep.subr.mxu0 %v228_v14  ;;  %1353 = vmatpush3.msra.mxu1 %v415_v21  ;;  %v1926_v56 = vld [vmem:[#allocation5 + $0x138] sm:$0xff]  ;;  %v1930_v57 = vld [vmem:[#allocation5 + $0x130] sm:$0xff]  ;;  %v1934_v58 = vld [vmem:[#allocation5 + $0x128] sm:$0xff] }
  0x5c   : > { %1301 = vmatpush3.msra.mxu0 %v228_v14  ;;  %1354 = vmatprep.subr.mxu1 %v414_v23  ;;  %v1938_v59 = vld [vmem:[#allocation5 + $0x120] sm:$0xff] }
  0x5d   : > { %1302 = vmatprep.subr.mxu0 %v227_v16  ;;  %1355 = vmatpush3.msra.mxu1 %v414_v23  ;;  %v1947_v60 = vld [vmem:[%s2328_s2] ss:$0 sm:$0xff] }
  0x5e   : > { %1303 = vmatpush3.msra.mxu0 %v227_v16  ;;  %1356 = vmatprep.subr.mxu1 %v413_v25 }
  0x5f   : > { %1304 = vmatprep.subr.mxu0 %v226_v18  ;;  %1357 = vmatpush3.msra.mxu1 %v413_v25 }
  0x60   : > { %1305 = vmatpush3.msra.mxu0 %v226_v18  ;;  %1358 = vmatprep.subr.mxu1 %v412_v27 }
  0x61   : > { %1306 = vmatprep.subr.mxu0 %v225_v20  ;;  %1359 = vmatpush3.msra.mxu1 %v412_v27 }
  0x62   : > { %1307 = vmatpush3.msra.mxu0 %v225_v20  ;;  %1360 = vmatprep.subr.mxu1 %v411_v29 }
  0x63   : > { %1308 = vmatprep.subr.mxu0 %v224_v22  ;;  %1361 = vmatpush3.msra.mxu1 %v411_v29 }
  0x64   : > { %1309 = vmatpush3.msra.mxu0 %v224_v22  ;;  %1362 = vmatprep.subr.mxu1 %v410_v44 }
  0x65   : > { %1310 = vmatprep.subr.mxu0 %v223_v24  ;;  %1363 = vmatpush3.msra.mxu1 %v410_v44 }
  0x66   : > { %1311 = vmatpush3.msra.mxu0 %v223_v24  ;;  %1364 = vmatprep.subr.mxu1 %v409_v45 }
  0x67   : > { %1312 = vmatprep.subr.mxu0 %v222_v26  ;;  %1365 = vmatpush3.msra.mxu1 %v409_v45  ;;  %v596_v45 = vld [vmem:[#allocation5 + $0x118] sm:$0xff] }
  0x68   : > { %1313 = vmatpush3.msra.mxu0 %v222_v26  ;;  %1366 = vmatprep.subr.mxu1 %v408_v46 }
  0x69   : > { %1315 = vmatmul.mubr.f32.vlgmr.msra.gmra.mxu0 %v207_v28  ;;  %1367 = vmatpush3.msra.mxu1 %v408_v46  ;;  %v595_v46 = vld [vmem:[#allocation5 + $0x110] sm:$0xff] }
  0x6a   : > { %1317 = vmatprep.mubr.f32.mxu0 %v208_v30  ;;  %1368 = vmatprep.subr.mxu1 %v407_v47 }
  0x6b   : > { %1369 = vmatpush3.msra.mxu1 %v407_v47  ;;  %1394 = vmatprep.subr.mxu0 %v608_v48  ;;  %v594_v47 = vld [vmem:[#allocation5 + $0x108] sm:$0xff] }
  0x6c   : > { %1450 = vmatprep.subr.mxu1 %v608_v48  ;;  %1395 = vmatpush3.msra.mxu0 %v608_v48 }
  0x6d   : > { %1318 = vmatmul.mubr.f32.gmra.mxu0 %v209_v31  ;;  %1396 = vmatprep.subr.mxu0 %v607_v49 }
  0x6e   : > { %1320 = vmatprep.mubr.f32.mxu0 %v210_v32  ;;  %1397 = vmatpush3.msra.mxu0 %v607_v49 }
  0x6f   : > { %1398 = vmatprep.subr.mxu0 %v606_v50 }
  0x70   : > { %1399 = vmatpush3.msra.mxu0 %v606_v50 }
  0x71   : > { %1321 = vmatmul.mubr.f32.gmra.mxu0 %v211_v33  ;;  %1400 = vmatprep.subr.mxu0 %v605_v51 }
  0x72   : > { %1323 = vmatprep.mubr.f32.mxu0 %v212_v34  ;;  %1401 = vmatpush3.msra.mxu0 %v605_v51 }
  0x73   : > { %1402 = vmatprep.subr.mxu0 %v1912_v52 }
  0x74   : > { %1403 = vmatpush3.msra.mxu0 %v1912_v52 }
  0x75   : > { %1324 = vmatmul.mubr.f32.gmra.mxu0 %v213_v35  ;;  %1404 = vmatprep.subr.mxu0 %v1914_v53 }
  0x76   : > { %1326 = vmatprep.mubr.f32.mxu0 %v214_v36  ;;  %1405 = vmatpush3.msra.mxu0 %v1914_v53 }
  0x77   : > { %1406 = vmatprep.subr.mxu0 %v1918_v54 }
  0x78   : > { %1407 = vmatpush3.msra.mxu0 %v1918_v54 }
  0x79   : > { %1327 = vmatmul.mubr.f32.gmra.mxu0 %v215_v37  ;;  %1408 = vmatprep.subr.mxu0 %v1922_v55 }
  0x7a   : > { %1329 = vmatprep.mubr.f32.mxu0 %v216_v38  ;;  %1409 = vmatpush3.msra.mxu0 %v1922_v55 }
  0x7b   : > { %1410 = vmatprep.subr.mxu0 %v1926_v56 }
  0x7c   : > { %1411 = vmatpush3.msra.mxu0 %v1926_v56 }
  0x7d   : > { %1330 = vmatmul.mubr.f32.gmra.mxu0 %v217_v39  ;;  %1412 = vmatprep.subr.mxu0 %v1930_v57 }
  0x7e   : > { %1332 = vmatprep.mubr.f32.mxu0 %v218_v40  ;;  %1413 = vmatpush3.msra.mxu0 %v1930_v57 }
  0x7f   : > { %1414 = vmatprep.subr.mxu0 %v1934_v58 }
  0x80   : > { %1415 = vmatpush3.msra.mxu0 %v1934_v58 }
  0x81   : > { %1333 = vmatmul.mubr.f32.gmra.mxu0 %v219_v41  ;;  %1416 = vmatprep.subr.mxu0 %v1938_v59 }
  0x82   : > { %1335 = vmatprep.mubr.f32.mxu0 %v220_v42  ;;  %1417 = vmatpush3.msra.mxu0 %v1938_v59 }
  0x83   : > { %1418 = vmatprep.subr.mxu0 %v596_v45 }
  0x84   : > { %1419 = vmatpush3.msra.mxu0 %v596_v45 }
  0x85   : > { %1336 = vmatmul.mubr.f32.gmra.mxu0 %v221_v43  ;;  %1420 = vmatprep.subr.mxu0 %v595_v46 }
  0x86   : > { %1421 = vmatpush3.msra.mxu0 %v595_v46 }
  0x87   : > { %1422 = vmatprep.subr.mxu0 %v594_v47 }
  0x88   : > { %1423 = vmatpush3.msra.mxu0 %v594_v47 }
 0x129   : > { %v1316_v61 = vpop.f32.mrf.mxu0 }
 0x12a   : > { %v317_v62 = vadd.f32 %v1316_v61, %v1947_v60 }
 0x12b   : > { %v311_v63 = vpop.f32.mrf.mxu0 }
 0x12c   : > { %v312_v0 = vadd.f32 %v1947_v60, %v311_v63  ;;  %v391_v3 = vmax.f32 %v317_v62, 0.0 }
 0x12d   : > { %v1319_v1 = vpop.f32.mrf.mxu0 }
 0x12e   : > { %v390_v2 = vmax.f32 %v312_v0, 0.0  ;;  %v327_v4 = vadd.f32 %v1319_v1, %v1947_v60 }
 0x12f   : > { %v321_v5 = vpop.f32.mrf.mxu0 }
 0x130   : > { %v322_v6 = vadd.f32 %v1947_v60, %v321_v5  ;;  %1370 = vmatprep.mubr.f32.mxu1 %v390_v2  ;;  %v393_v9 = vmax.f32 %v327_v4, 0.0 }
 0x131   : > { %v1322_v7 = vpop.f32.mrf.mxu0  ;;  %1371 = vmatmul.mubr.f32.vlgmr.msra.gmra.mxu1 %v391_v3 }
 0x132   : > { %v392_v8 = vmax.f32 %v322_v6, 0.0  ;;  %1466 = vmatpush3.msra.mxu1 %v608_v48  ;;  %v337_v10 = vadd.f32 %v1322_v7, %v1947_v60  ;;  %v593_v48 = vld [vmem:[#allocation5 + $0x100] sm:$0xff] }
 0x133   : > { %v331_v11 = vpop.f32.mrf.mxu0  ;;  %1451 = vmatprep.subr.mxu1 %v607_v49  ;;  %1424 = vmatprep.subr.mxu0 %v593_v48 }
 0x134   : > { %v332_v12 = vadd.f32 %v1947_v60, %v331_v11  ;;  %1373 = vmatprep.mubr.f32.mxu1 %v392_v8  ;;  %1467 = vmatpush3.msra.mxu1 %v607_v49  ;;  %v395_v15 = vmax.f32 %v337_v10, 0.0  ;;  %v1176_v49 = vld [vmem:[%s2328_s2 + $0x1] ss:$0 sm:$0xff] }
 0x135   : > { %v1325_v13 = vpop.f32.mrf.mxu0  ;;  %1374 = vmatmul.mubr.f32.gmra.mxu1 %v393_v9  ;;  %1452 = vmatprep.subr.mxu1 %v606_v50 }
 0x136   : > { %v394_v14 = vmax.f32 %v332_v12, 0.0  ;;  %1468 = vmatpush3.msra.mxu1 %v606_v50  ;;  %v347_v16 = vadd.f32 %v1325_v13, %v1947_v60  ;;  %1425 = vmatpush3.msra.mxu0 %v593_v48 }
 0x137   : > { %v341_v17 = vpop.f32.mrf.mxu0  ;;  %1453 = vmatprep.subr.mxu1 %v605_v51 }
 0x138   : > { %v342_v18 = vadd.f32 %v1947_v60, %v341_v17  ;;  %1376 = vmatprep.mubr.f32.mxu1 %v394_v14  ;;  %1469 = vmatpush3.msra.mxu1 %v605_v51  ;;  %v397_v21 = vmax.f32 %v347_v16, 0.0 }
 0x139   : > { %v1328_v19 = vpop.f32.mrf.mxu0  ;;  %1377 = vmatmul.mubr.f32.gmra.mxu1 %v395_v15  ;;  %1454 = vmatprep.subr.mxu1 %v1912_v52 }
 0x13a   : > { %v396_v20 = vmax.f32 %v342_v18, 0.0  ;;  %1470 = vmatpush3.msra.mxu1 %v1912_v52  ;;  %v357_v22 = vadd.f32 %v1328_v19, %v1947_v60 }
 0x13b   : > { %v351_v23 = vpop.f32.mrf.mxu0  ;;  %1455 = vmatprep.subr.mxu1 %v1914_v53 }
 0x13c   : > { %v352_v24 = vadd.f32 %v1947_v60, %v351_v23  ;;  %1379 = vmatprep.mubr.f32.mxu1 %v396_v20  ;;  %1471 = vmatpush3.msra.mxu1 %v1914_v53  ;;  %v399_v27 = vmax.f32 %v357_v22, 0.0 }
 0x13d   : > { %v1331_v25 = vpop.f32.mrf.mxu0  ;;  %1380 = vmatmul.mubr.f32.gmra.mxu1 %v397_v21  ;;  %1456 = vmatprep.subr.mxu1 %v1918_v54 }
 0x13e   : > { %v398_v26 = vmax.f32 %v352_v24, 0.0  ;;  %1472 = vmatpush3.msra.mxu1 %v1918_v54  ;;  %v367_v28 = vadd.f32 %v1331_v25, %v1947_v60 }
 0x13f   : > { %v361_v29 = vpop.f32.mrf.mxu0  ;;  %1457 = vmatprep.subr.mxu1 %v1922_v55 }
 0x140   : > { %v362_v30 = vadd.f32 %v1947_v60, %v361_v29  ;;  %1382 = vmatprep.mubr.f32.mxu1 %v398_v26  ;;  %1473 = vmatpush3.msra.mxu1 %v1922_v55  ;;  %v401_v33 = vmax.f32 %v367_v28, 0.0 }
 0x141   : > { %v1334_v31 = vpop.f32.mrf.mxu0  ;;  %1383 = vmatmul.mubr.f32.gmra.mxu1 %v399_v27  ;;  %1458 = vmatprep.subr.mxu1 %v1926_v56 }
 0x142   : > { %v400_v32 = vmax.f32 %v362_v30, 0.0  ;;  %1474 = vmatpush3.msra.mxu1 %v1926_v56  ;;  %v377_v34 = vadd.f32 %v1334_v31, %v1947_v60 }
 0x143   : > { %v371_v35 = vpop.f32.mrf.mxu0  ;;  %1459 = vmatprep.subr.mxu1 %v1930_v57 }
 0x144   : > { %v372_v36 = vadd.f32 %v1947_v60, %v371_v35  ;;  %1385 = vmatprep.mubr.f32.mxu1 %v400_v32  ;;  %1475 = vmatpush3.msra.mxu1 %v1930_v57  ;;  %v403_v39 = vmax.f32 %v377_v34, 0.0  ;;  %v1987_v34 = vld [vmem:[%s2328_s2 + $0x2] ss:$0 sm:$0xff] }
 0x145   : > { %v1337_v37 = vpop.f32.mrf.mxu0  ;;  %1386 = vmatmul.mubr.f32.gmra.mxu1 %v401_v33  ;;  %1460 = vmatprep.subr.mxu1 %v1934_v58 }
 0x146   : > { %v402_v38 = vmax.f32 %v372_v36, 0.0  ;;  %1476 = vmatpush3.msra.mxu1 %v1934_v58  ;;  %v387_v40 = vadd.f32 %v1337_v37, %v1947_v60 }
 0x147   : > { %v381_v41 = vpop.f32.mrf.mxu0  ;;  %1461 = vmatprep.subr.mxu1 %v1938_v59 }
 0x148   : > { %v382_v42 = vadd.f32 %v1947_v60, %v381_v41  ;;  %1388 = vmatprep.mubr.f32.mxu1 %v402_v38  ;;  %1477 = vmatpush3.msra.mxu1 %v1938_v59  ;;  %v405_v44 = vmax.f32 %v387_v40, 0.0 }
 0x149   : > { %1389 = vmatmul.mubr.f32.gmra.mxu1 %v403_v39  ;;  %1462 = vmatprep.subr.mxu1 %v596_v45 }
 0x14a   : > { %v404_v43 = vmax.f32 %v382_v42, 0.0  ;;  %1478 = vmatpush3.msra.mxu1 %v596_v45 }
 0x14b   : > { %1463 = vmatprep.subr.mxu1 %v595_v46 }
 0x14c   : > { %1391 = vmatprep.mubr.f32.mxu1 %v404_v43  ;;  %1479 = vmatpush3.msra.mxu1 %v595_v46 }
 0x14d   : > { %1392 = vmatmul.mubr.f32.gmra.mxu1 %v405_v44  ;;  %1464 = vmatprep.subr.mxu1 %v594_v47 }
 0x14e   : > { %1480 = vmatpush3.msra.mxu1 %v594_v47 }
 0x14f   : > { %1465 = vmatprep.subr.mxu1 %v593_v48 }
 0x150   : > { %1481 = vmatpush3.msra.mxu1 %v593_v48 }
 0x1f1   : > { %v1372_v50 = vpop.f32.mrf.mxu1 }
 0x1f2   : > { %v503_v51 = vadd.f32 %v1372_v50, %v1176_v49 }
 0x1f3   : > { %v497_v52 = vpop.f32.mrf.mxu1 }
 0x1f4   : > { %v498_v53 = vadd.f32 %v1176_v49, %v497_v52  ;;  %v577_v56 = vmax.f32 %v503_v51, 0.0 }
 0x1f5   : > { %v1375_v54 = vpop.f32.mrf.mxu1 }
 0x1f6   : > { %v576_v55 = vmax.f32 %v498_v53, 0.0  ;;  %v513_v57 = vadd.f32 %v1375_v54, %v1176_v49 }
 0x1f7   : > { %v507_v58 = vpop.f32.mrf.mxu1 }
 0x1f8   : > { %v508_v59 = vadd.f32 %v1176_v49, %v507_v58  ;;  %1426 = vmatprep.mubr.f32.mxu0 %v576_v55  ;;  %v579_v62 = vmax.f32 %v513_v57, 0.0 }
 0x1f9   : > { %v1378_v60 = vpop.f32.mrf.mxu1  ;;  %1427 = vmatmul.mubr.f32.vlgmr.msra.gmra.mxu0 %v577_v56 }
 0x1fa   : > { %v578_v61 = vmax.f32 %v508_v59, 0.0  ;;  %v523_v63 = vadd.f32 %v1378_v60, %v1176_v49 }
 0x1fb   : > { %v517_v0 = vpop.f32.mrf.mxu1 }
 0x1fc   : > { %v518_v1 = vadd.f32 %v1176_v49, %v517_v0  ;;  %1429 = vmatprep.mubr.f32.mxu0 %v578_v61  ;;  %v581_v4 = vmax.f32 %v523_v63, 0.0 }
 0x1fd   : > { %v1381_v2 = vpop.f32.mrf.mxu1  ;;  %1430 = vmatmul.mubr.f32.gmra.mxu0 %v579_v62 }
 0x1fe   : > { %v580_v3 = vmax.f32 %v518_v1, 0.0  ;;  %v533_v5 = vadd.f32 %v1381_v2, %v1176_v49 }
 0x1ff   : > { %v527_v6 = vpop.f32.mrf.mxu1 }
 0x200   : > { %v528_v7 = vadd.f32 %v1176_v49, %v527_v6  ;;  %1432 = vmatprep.mubr.f32.mxu0 %v580_v3  ;;  %v583_v10 = vmax.f32 %v533_v5, 0.0 }
 0x201   : > { %v1384_v8 = vpop.f32.mrf.mxu1  ;;  %1433 = vmatmul.mubr.f32.gmra.mxu0 %v581_v4 }
 0x202   : > { %v582_v9 = vmax.f32 %v528_v7, 0.0  ;;  %v543_v11 = vadd.f32 %v1384_v8, %v1176_v49 }
 0x203   : > { %v537_v12 = vpop.f32.mrf.mxu1 }
 0x204   : > { %v538_v13 = vadd.f32 %v1176_v49, %v537_v12  ;;  %1435 = vmatprep.mubr.f32.mxu0 %v582_v9  ;;  %v585_v16 = vmax.f32 %v543_v11, 0.0 }
 0x205   : > { %v1387_v14 = vpop.f32.mrf.mxu1  ;;  %1436 = vmatmul.mubr.f32.gmra.mxu0 %v583_v10 }
 0x206   : > { %v584_v15 = vmax.f32 %v538_v13, 0.0  ;;  %v553_v17 = vadd.f32 %v1387_v14, %v1176_v49 }
 0x207   : > { %v547_v18 = vpop.f32.mrf.mxu1 }
 0x208   : > { %v548_v19 = vadd.f32 %v1176_v49, %v547_v18  ;;  %1438 = vmatprep.mubr.f32.mxu1 %v584_v15  ;;  %v587_v22 = vmax.f32 %v553_v17, 0.0 }
 0x209   : > { %v1390_v20 = vpop.f32.mrf.mxu1  ;;  %1439 = vmatmul.mubr.f32.vlgmr.msra.gmra.mxu1 %v585_v16 }
 0x20a   : > { %v586_v21 = vmax.f32 %v548_v19, 0.0  ;;  %v563_v23 = vadd.f32 %v1390_v20, %v1176_v49 }
 0x20b   : > { %v557_v24 = vpop.f32.mrf.mxu1 }
 0x20c   : > { %v558_v25 = vadd.f32 %v1176_v49, %v557_v24  ;;  %1441 = vmatprep.mubr.f32.mxu1 %v586_v21  ;;  %v589_v28 = vmax.f32 %v563_v23, 0.0 }
 0x20d   : > { %v1393_v26 = vpop.f32.mrf.mxu1  ;;  %1442 = vmatmul.mubr.f32.gmra.mxu1 %v587_v22 }
 0x20e   : > { %v588_v27 = vmax.f32 %v558_v25, 0.0  ;;  %v573_v29 = vadd.f32 %v1393_v26, %v1176_v49 }
 0x20f   : > { %v567_v30 = vpop.f32.mrf.mxu1 }
 0x210   : > { %v568_v31 = vadd.f32 %v1176_v49, %v567_v30  ;;  %1444 = vmatprep.mubr.f32.mxu1 %v588_v27  ;;  %v591_v33 = vmax.f32 %v573_v29, 0.0 }
 0x211   : > { %1445 = vmatmul.mubr.f32.gmra.mxu1 %v589_v28 }
 0x212   : > { %v590_v32 = vmax.f32 %v568_v31, 0.0 }
 0x214   : > { %1447 = vmatprep.mubr.f32.mxu1 %v590_v32 }
 0x215   : > { %1448 = vmatmul.mubr.f32.gmra.mxu1 %v591_v33 }
 0x2b9   : > { %v1428_v35 = vpop.f32.mrf.mxu0 }
 0x2ba   : > { %v1990_v36 = vadd.f32 %v1428_v35, %v1987_v34 }
 0x2bb   : > { %v683_v37 = vpop.f32.mrf.mxu0 }
 0x2bc   : > { %v811_v38 = vand.u32 2147483647, %v1990_v36  ;;  %v1994_v39 = vadd.f32 %v1987_v34, %v683_v37  ;;  %v763_v29 = vmax.f32 %v1990_v36, 0.0  ;;  %vm779_vm1 = vcmp.ne.f32.partialorder %v1990_v36, %v1990_v36 }
 0x2bd   : > { %v1431_v40 = vpop.f32.mrf.mxu0 }
 0x2be   : > { %v827_v41 = vsub.f32 0.0, %v811_v38  ;;  %v810_v42 = vand.u32 2147483647, %v1994_v39  ;;  %v1998_v43 = vadd.f32 %v1431_v40, %v1987_v34  ;;  %v762_v30 = vmax.f32 %v1994_v39, 0.0 }
 0x2bf   : > { %v693_v44 = vpop.f32.mrf.mxu0  ;;  %vm778_vm3 = vcmp.ne.f32.partialorder %v1994_v39, %v1994_v39 }
 0x2c0   : > { %v844_v45 = vmul.f32 1.442695, %v827_v41  ;;  %v826_v46 = vsub.f32 0.0, %v810_v42  ;;  %v2001_v47 = vadd.f32 %v1987_v34, %v693_v44  ;;  %v813_v48 = vand.u32 2147483647, %v1998_v43 }
 0x2c1   : > { %v1434_v49 = vpop.f32.mrf.mxu0  ;;  %v765_v31 = vmax.f32 %v1998_v43, 0.0  ;;  %vm781_vm6 = vcmp.ne.f32.partialorder %v1998_v43, %v1998_v43 }
 0x2c2   : > { %1543 = vpow2.f32 %v844_v45  ;;  %v842_v50 = vmul.f32 1.442695, %v826_v46  ;;  %v829_v51 = vsub.f32 0.0, %v813_v48  ;;  %v812_v52 = vand.u32 2147483647, %v2001_v47 }
 0x2c3   : > { %v2006_v53 = vadd.f32 %v1434_v49, %v1987_v34  ;;  %v703_v54 = vpop.f32.mrf.mxu0  ;;  %v764_v37 = vmax.f32 %v2001_v47, 0.0  ;;  %vm780_vm7 = vcmp.ne.f32.partialorder %v2001_v47, %v2001_v47 }
 0x2c4   : > { %1545 = vpow2.f32 %v842_v50  ;;  %v2009_v55 = vadd.f32 %v1987_v34, %v703_v54  ;;  %v848_v56 = vmul.f32 1.442695, %v829_v51  ;;  %v828_v57 = vsub.f32 0.0, %v812_v52 }
 0x2c5   : > { %v1437_v58 = vpop.f32.mrf.mxu0  ;;  %v815_v59 = vand.u32 2147483647, %v2006_v53  ;;  %v767_v44 = vmax.f32 %v2006_v53, 0.0  ;;  %vm783_vm9 = vcmp.ne.f32.partialorder %v2006_v53, %v2006_v53 }
 0x2c6   : > { %v814_v60 = vand.u32 2147483647, %v2009_v55  ;;  %1547 = vpow2.f32 %v848_v56  ;;  %v846_v61 = vmul.f32 1.442695, %v828_v57  ;;  %v2014_v62 = vadd.f32 %v1437_v58, %v1987_v34 }
 0x2c7   : > { %v713_v63 = vpop.f32.mrf.mxu0  ;;  %v831_v0 = vsub.f32 0.0, %v815_v59  ;;  %v766_v48 = vmax.f32 %v2009_v55, 0.0  ;;  %vm782_vm10 = vcmp.ne.f32.partialorder %v2009_v55, %v2009_v55 }
 0x2c8   : > { %v830_v1 = vsub.f32 0.0, %v814_v60  ;;  %v2017_v2 = vadd.f32 %v1987_v34, %v713_v63  ;;  %1549 = vpow2.f32 %v846_v61  ;;  %v817_v3 = vand.u32 2147483647, %v2014_v62 }
 0x2c9   : > { %v1440_v4 = vpop.f32.mrf.mxu1  ;;  %v852_v5 = vmul.f32 1.442695, %v831_v0  ;;  %v769_v58 = vmax.f32 %v2014_v62, 0.0  ;;  %vm785_vm13 = vcmp.ne.f32.partialorder %v2014_v62, %v2014_v62 }
 0x2ca   : > { %v850_v6 = vmul.f32 1.442695, %v830_v1  ;;  %v833_v7 = vsub.f32 0.0, %v817_v3  ;;  %v816_v8 = vand.u32 2147483647, %v2017_v2  ;;  %v2022_v9 = vadd.f32 %v1440_v4, %v1987_v34 }
 0x2cb   : > { %v723_v10 = vpop.f32.mrf.mxu1  ;;  %1551 = vpow2.f32 %v852_v5  ;;  %v768_v0 = vmax.f32 %v2017_v2, 0.0  ;;  %vm784_vm14 = vcmp.ne.f32.partialorder %v2017_v2, %v2017_v2 }
 0x2cc   : > { %v2025_v11 = vadd.f32 %v1987_v34, %v723_v10  ;;  %1553 = vpow2.f32 %v850_v6  ;;  %v856_v12 = vmul.f32 1.442695, %v833_v7  ;;  %v832_v13 = vsub.f32 0.0, %v816_v8 }
 0x2cd   : > { %v819_v14 = vand.u32 2147483647, %v2022_v9  ;;  %v1443_v18 = vpop.f32.mrf.mxu1 }
 0x2ce   : > { %1555 = vpow2.f32 %v856_v12  ;;  %v854_v16 = vmul.f32 1.442695, %v832_v13  ;;  %v818_v17 = vand.u32 2147483647, %v2025_v11  ;;  %v2030_v24 = vadd.f32 %v1443_v18, %v1987_v34 }
 0x2cf   : > { %v1544_v15 = vpop.eup %1543  ;;  %v835_v20 = vsub.f32 0.0, %v819_v14  ;;  %v733_v40 = vpop.f32.mrf.mxu1 }
 0x2d0   : > { %v883_v19 = vadd.f32 1.0, %v1544_v15  ;;  %1557 = vpow2.f32 %v854_v16  ;;  %v834_v22 = vsub.f32 0.0, %v818_v17  ;;  %v886_v27 = vmul.f32 -0.5, %v1544_v15 }
 0x2d1   : > { %v1546_v21 = vpop.eup %1545  ;;  %v860_v25 = vmul.f32 1.442695, %v835_v20  ;;  %v821_v38 = vand.u32 2147483647, %v2030_v24  ;;  %v889_v41 = vand.u32 2147483647, %v1544_v15  ;;  %v2042_v52 = vadd.f32 %v1987_v34, %v733_v40 }
 0x2d2   : > { %1559 = vlog2.f32 %v883_v19  ;;  %v874_v23 = vadd.f32 1.0, %v1546_v21  ;;  %v858_v28 = vmul.f32 1.442695, %v834_v22  ;;  %v877_v35 = vmul.f32 -0.5, %v1546_v21 }
 0x2d3   : > { %v1548_v26 = vpop.eup %1547  ;;  %v887_v45 = vadd.f32 1.0, %v886_v27  ;;  %v880_v50 = vand.u32 2147483647, %v1546_v21  ;;  %v837_v59 = vsub.f32 0.0, %v821_v38  ;;  %vm2048_vm0 = vcmp.lt.f32.partialorder %v889_v41, 0.0004427343 }
 0x2d4   : > { %1561 = vlog2.f32 %v874_v23  ;;  %v901_v32 = vadd.f32 1.0, %v1548_v26  ;;  %v904_v46 = vmul.f32 -0.5, %v1548_v26  ;;  %v878_v56 = vadd.f32 1.0, %v877_v35 }
 0x2d5   : > { %v1550_v33 = vpop.eup %1549  ;;  %1563 = vpow2.f32 %v860_v25  ;;  %v907_v61 = vand.u32 2147483647, %v1548_v26  ;;  %v888_v3 = vmul.f32 %v1544_v15, %v887_v45  ;;  %vm2058_vm2 = vcmp.lt.f32.partialorder %v880_v50, 0.0004427343 }
 0x2d6   : > { %1565 = vlog2.f32 %v901_v32  ;;  %v892_v42 = vadd.f32 1.0, %v1550_v33  ;;  %v895_v51 = vmul.f32 -0.5, %v1550_v33  ;;  %v905_v4 = vadd.f32 1.0, %v904_v46 }
 0x2d7   : > { %1567 = vpow2.f32 %v858_v28  ;;  %v898_v5 = vand.u32 2147483647, %v1550_v33  ;;  %v820_v8 = vand.u32 2147483647, %v2042_v52  ;;  %v879_v12 = vmul.f32 %v1546_v21, %v878_v56 }
 0x2d8   : > { %v2039_v49 = vpop.eup %1551  ;;  %1569 = vlog2.f32 %v892_v42  ;;  %v896_v7 = vadd.f32 1.0, %v895_v51  ;;  %v864_v15 = vmul.f32 1.442695, %v837_v59  ;;  %vm2069_vm4 = vcmp.lt.f32.partialorder %v907_v61, 0.0004427343 }
 0x2d9   : > { %v2044_v54 = vpop.eup %1553  ;;  %v919_v57 = vadd.f32 1.0, %v2039_v49  ;;  %v922_v13 = vmul.f32 -0.5, %v2039_v49  ;;  %v925_v18 = vand.u32 2147483647, %v2039_v49  ;;  %v906_v23 = vmul.f32 %v1548_v26, %v905_v4 }
 0x2da   : > { %v910_v63 = vadd.f32 1.0, %v2044_v54  ;;  %v913_v19 = vmul.f32 -0.5, %v2044_v54  ;;  %vm2076_vm5 = vcmp.lt.f32.partialorder %v898_v5, 0.0004427343  ;;  %v897_v27 = vmul.f32 %v1550_v33, %v896_v7 }
 0x2db   : > { %v2054_v1 = vpop.eup %1555  ;;  %1571 = vlog2.f32 %v919_v57  ;;  %v916_v28 = vand.u32 2147483647, %v2044_v54  ;;  %v836_v32 = vsub.f32 0.0, %v820_v8  ;;  %v923_v40 = vadd.f32 1.0, %v922_v13  ;;  %v1446_v57 = vpop.f32.mrf.mxu1 }
 0x2dc   : > { %1573 = vlog2.f32 %v910_v63  ;;  %v937_v14 = vadd.f32 1.0, %v2054_v1  ;;  %vm2091_vm8 = vcmp.lt.f32.partialorder %v925_v18, 0.0004427343  ;;  %v914_v42 = vadd.f32 1.0, %v913_v19 }
 0x2dd   : > { %v2063_v10 = vpop.eup %1557  ;;  %v862_v45 = vmul.f32 1.442695, %v836_v32  ;;  %v940_v51 = vmul.f32 -0.5, %v2054_v1  ;;  %v943_v56 = vand.u32 2147483647, %v2054_v1  ;;  %v2127_v8 = vadd.f32 %v1446_v57, %v1987_v34 }
 0x2de   : > { %v928_v20 = vadd.f32 1.0, %v2063_v10  ;;  %1575 = vlog2.f32 %v937_v14  ;;  %v931_v4 = vmul.f32 -0.5, %v2063_v10  ;;  %v934_v5 = vand.u32 2147483647, %v2063_v10  ;;  %v743_v14 = vpop.f32.mrf.mxu1 }
 0x2df   : > { %v1560_v16 = vpop.eup %1559  ;;  %vm2132_vm11 = vcmp.lt.f32.partialorder %v916_v28, 0.0004427343  ;;  %v924_v17 = vmul.f32 %v2039_v49, %v923_v40  ;;  %v915_v18 = vmul.f32 %v2044_v54, %v914_v42  ;;  %vm2140_vm12 = vcmp.lt.f32.partialorder %v943_v56, 0.0004427343 }
 0x2e0   : > { %v885_v22 = vmul.f32 0.6931472, %v1560_v16  ;;  %1577 = vlog2.f32 %v928_v20  ;;  %v932_v49 = vadd.f32 1.0, %v931_v4  ;;  %vm2155_vm15 = vcmp.lt.f32.partialorder %v934_v5, 0.0004427343 }
 0x2e1   : > { %v1562_v25 = vpop.eup %1561  ;;  %1579 = vpow2.f32 %v864_v15 }
 0x2e2   : > { %v891_v35 = vsel %vm2048_vm0, %v888_v3, %v885_v22  ;;  %v876_v38 = vmul.f32 0.6931472, %v1562_v25  ;;  %v2085_v26 = vpop.eup %1563  ;;  %1581 = vpow2.f32 %v862_v45  ;;  %v2161_v25 = vadd.f32 %v1987_v34, %v743_v14 }
 0x2e3   : > { %v1019_v41 = vadd.f32 %v891_v35, %v763_v29  ;;  %v1566_v46 = vpop.eup %1565  ;;  %v955_v29 = vadd.f32 1.0, %v2085_v26  ;;  %v958_v32 = vmul.f32 -0.5, %v2085_v26  ;;  %vm787_vm0 = vcmp.ne.f32.partialorder %v2022_v9, %v2022_v9 }
 0x2e4   : > { %v882_v50 = vsel %vm2058_vm2, %v879_v12, %v876_v38  ;;  %v2100_v59 = vpop.eup %1567  ;;  %v903_v63 = vmul.f32 0.6931472, %v1566_v46  ;;  %v933_v46 = vmul.f32 %v2063_v10, %v932_v49 }
 0x2e5   : > { %v1035_v60 = vsel %vm779_vm1, %v1990_v36, %v1019_v41  ;;  %v1018_v61 = vadd.f32 %v882_v50, %v762_v30  ;;  %v1570_v3 = vpop.eup %1569  ;;  %1583 = vlog2.f32 %v955_v29  ;;  %v946_v36 = vadd.f32 1.0, %v2100_v59 }
 0x2e6   : > { %1051 = vst [vmem:[%s2110_s25 + $0x8] sm:$0xff] %v1035_v60  ;;  %v909_v6 = vsel %vm2069_vm4, %v906_v23, %v903_v63  ;;  %v894_v7 = vmul.f32 0.6931472, %v1570_v3  ;;  %v949_v41 = vmul.f32 -0.5, %v2100_v59  ;;  %v822_v50 = vand.u32 2147483647, %v2161_v25 }
 0x2e7   : > { %v1034_v30 = vsel %vm778_vm3, %v1994_v39, %v1018_v61  ;;  %v1021_v12 = vadd.f32 %v909_v6, %v765_v31  ;;  %v941_v39 = vadd.f32 1.0, %v940_v51  ;;  %1585 = vlog2.f32 %v946_v36 }
 0x2e8   : > { %1050 = vst [vmem:[%s2110_s25] sm:$0xff] %v1034_v30  ;;  %v1572_v15 = vpop.eup %1571  ;;  %v900_v16 = vsel %vm2076_vm5, %v897_v27, %v894_v7  ;;  %v961_v29 = vand.u32 2147483647, %v2085_v26  ;;  %v959_v60 = vadd.f32 1.0, %v958_v32  ;;  %v950_v3 = vadd.f32 1.0, %v949_v41 }
 0x2e9   : > { %v1574_v31 = vpop.eup %1573  ;;  %v1037_v20 = vsel %vm781_vm6, %v1998_v43, %v1021_v12  ;;  %v1020_v22 = vadd.f32 %v900_v16, %v764_v37  ;;  %v921_v23 = vmul.f32 0.6931472, %v1572_v15  ;;  %v823_v43 = vand.u32 2147483647, %v2127_v8 }
 0x2ea   : > { %1053 = vst [vmem:[%s2110_s25 + $0x18] sm:$0xff] %v1037_v20  ;;  %v912_v54 = vmul.f32 0.6931472, %v1574_v31  ;;  %v942_v28 = vmul.f32 %v2054_v1, %v941_v39  ;;  %v838_v36 = vsub.f32 0.0, %v822_v50  ;;  %v771_v7 = vmax.f32 %v2022_v9, 0.0 }
 0x2eb   : > { %v1036_v37 = vsel %vm780_vm7, %v2001_v47, %v1020_v22  ;;  %v927_v27 = vsel %vm2091_vm8, %v924_v17, %v921_v23  ;;  %v1576_v35 = vpop.eup %1575  ;;  %v839_v42 = vsub.f32 0.0, %v823_v43  ;;  %v1449_v47 = vpop.f32.mrf.mxu1  ;;  %v952_v12 = vand.u32 2147483647, %v2100_v59 }
 0x2ec   : > { %1052 = vst [vmem:[%s2110_s25 + $0x10] sm:$0xff] %v1036_v37  ;;  %v1023_v38 = vadd.f32 %v927_v27, %v767_v44  ;;  %v918_v40 = vsel %vm2132_vm11, %v915_v18, %v912_v54  ;;  %v939_v45 = vmul.f32 0.6931472, %v1576_v35  ;;  %v2206_v30 = vadd.f32 %v1449_v47, %v1987_v34 }
 0x2ed   : > { %v1578_v33 = vpop.eup %1577  ;;  %v1022_v1 = vadd.f32 %v918_v40, %v766_v48  ;;  %v868_v57 = vmul.f32 1.442695, %v839_v42  ;;  %v753_v4 = vpop.f32.mrf.mxu1  ;;  %v960_v14 = vmul.f32 %v2085_v26, %v959_v60  ;;  %vm962_vm1 = vcmp.lt.f32.partialorder %v961_v29, 0.0004427343 }
 0x2ee   : > { %v2181_v51 = vpop.eup %1579  ;;  %v1039_v44 = vsel %vm783_vm9, %v2006_v53, %v1023_v38  ;;  %v930_v56 = vmul.f32 0.6931472, %v1578_v33  ;;  %v945_v10 = vsel %vm2140_vm12, %v942_v28, %v939_v45  ;;  %v2222_v15 = vadd.f32 %v1987_v34, %v753_v4 }
 0x2ef   : > { %1055 = vst [vmem:[%s2110_s25 + $0x28] sm:$0xff] %v1039_v44  ;;  %v1038_v48 = vsel %vm782_vm10, %v2009_v55, %v1022_v1  ;;  %v973_v61 = vadd.f32 1.0, %v2181_v51  ;;  %v1025_v53 = vadd.f32 %v945_v10, %v769_v58  ;;  %1587 = vpow2.f32 %v868_v57  ;;  %v2201_v5 = vpop.eup %1581 }
 0x2f0   : > { %1054 = vst [vmem:[%s2110_s25 + $0x20] sm:$0xff] %v1038_v48  ;;  %v936_v63 = vsel %vm2155_vm15, %v933_v46, %v930_v56  ;;  %v964_v13 = vadd.f32 1.0, %v2201_v5  ;;  %v951_v19 = vmul.f32 %v2100_v59, %v950_v3  ;;  %v770_v34 = vmax.f32 %v2025_v11, 0.0 }
 0x2f1   : > { %v1024_v55 = vadd.f32 %v936_v63, %v768_v0  ;;  %1589 = vlog2.f32 %v973_v61  ;;  %v1041_v58 = vsel %vm785_vm13, %v2014_v62, %v1025_v53  ;;  %v866_v62 = vmul.f32 1.442695, %v838_v36 }
 0x2f2   : > { %v1584_v6 = vpop.eup %1583  ;;  %1057 = vst [vmem:[%s2110_s25 + $0x38] sm:$0xff] %v1041_v58  ;;  %1591 = vlog2.f32 %v964_v13  ;;  %vm953_vm2 = vcmp.lt.f32.partialorder %v952_v12, 0.0004427343  ;;  %v976_v20 = vmul.f32 -0.5, %v2181_v51  ;;  %v824_v23 = vand.u32 2147483647, %v2222_v15 }
 0x2f3   : > { %v1040_v0 = vsel %vm784_vm14, %v2017_v2, %v1024_v55  ;;  %v957_v39 = vmul.f32 0.6931472, %v1584_v6  ;;  %v825_v2 = vand.u32 2147483647, %v2206_v30  ;;  %1593 = vpow2.f32 %v866_v62 }
 0x2f4   : > { %v1586_v16 = vpop.eup %1585  ;;  %1056 = vst [vmem:[%s2110_s25 + $0x30] sm:$0xff] %v1040_v0  ;;  %vm786_vm3 = vcmp.ne.f32.partialorder %v2025_v11, %v2025_v11  ;;  %v840_v21 = vsub.f32 0.0, %v824_v23  ;;  %v967_v37 = vmul.f32 -0.5, %v2201_v5  ;;  %v977_v27 = vadd.f32 1.0, %v976_v20 }
 0x2f5   : > { %v963_v17 = vsel %vm962_vm1, %v960_v14, %v957_v39  ;;  %v948_v18 = vmul.f32 0.6931472, %v1586_v16  ;;  %v841_v22 = vsub.f32 0.0, %v825_v2  ;;  %v979_v32 = vand.u32 2147483647, %v2181_v51 }
 0x2f6   : > { %v1027_v31 = vadd.f32 %v963_v17, %v771_v7  ;;  %v870_v28 = vmul.f32 1.442695, %v840_v21  ;;  %v968_v38 = vadd.f32 1.0, %v967_v37  ;;  %v978_v42 = vmul.f32 %v2181_v51, %v977_v27 }
 0x2f7   : > { %v954_v26 = vsel %vm953_vm2, %v951_v19, %v948_v18  ;;  %v872_v54 = vmul.f32 1.442695, %v841_v22  ;;  %v970_v47 = vand.u32 2147483647, %v2201_v5  ;;  %vm980_vm4 = vcmp.lt.f32.partialorder %v979_v32, 0.0004427343 }
 0x2f8   : > { %v1043_v49 = vsel %vm787_vm0, %v2022_v9, %v1027_v31  ;;  %v1026_v59 = vadd.f32 %v954_v26, %v770_v34  ;;  %v969_v50 = vmul.f32 %v2201_v5, %v968_v38  ;;  %vm789_vm5 = vcmp.ne.f32.partialorder %v2030_v24, %v2030_v24 }
 0x2f9   : > { %1059 = vst [vmem:[%s2110_s25 + $0x48] sm:$0xff] %v1043_v49  ;;  %1595 = vpow2.f32 %v872_v54  ;;  %v772_v51 = vmax.f32 %v2042_v52, 0.0  ;;  %vm971_vm6 = vcmp.lt.f32.partialorder %v970_v47, 0.0004427343  ;;  %vm788_vm7 = vcmp.ne.f32.partialorder %v2042_v52, %v2042_v52 }
 0x2fa   : > { %v1042_v43 = vsel %vm786_vm3, %v2025_v11, %v1026_v59  ;;  %1597 = vpow2.f32 %v870_v28  ;;  %v773_v11 = vmax.f32 %v2030_v24, 0.0  ;;  %v775_v58 = vmax.f32 %v2127_v8, 0.0 }
 0x2fb   : > { %1058 = vst [vmem:[%s2110_s25 + $0x40] sm:$0xff] %v1042_v43  ;;  %vm791_vm9 = vcmp.ne.f32.partialorder %v2127_v8, %v2127_v8  ;;  %v774_v18 = vmax.f32 %v2161_v25, 0.0  ;;  %vm790_vm11 = vcmp.ne.f32.partialorder %v2161_v25, %v2161_v25  ;;  %v777_v54 = vmax.f32 %v2206_v30, 0.0 }
 0x2fc   : > { %v1588_v35 = vpop.eup %1587  ;;  %v776_v28 = vmax.f32 %v2222_v15, 0.0  ;;  %vm793_vm14 = vcmp.ne.f32.partialorder %v2206_v30, %v2206_v30  ;;  %vm792_vm15 = vcmp.ne.f32.partialorder %v2222_v15, %v2222_v15 }
 0x2fd   : > { %v991_v40 = vadd.f32 1.0, %v1588_v35  ;;  %v994_v10 = vmul.f32 -0.5, %v1588_v35  ;;  %v997_v4 = vand.u32 2147483647, %v1588_v35 }
 0x2fe   : > { %v1590_v9 = vpop.eup %1589 }
 0x2ff   : > { %v975_v41 = vmul.f32 0.6931472, %v1590_v9  ;;  %1599 = vlog2.f32 %v991_v40  ;;  %v1592_v33 = vpop.eup %1591  ;;  %v995_v3 = vadd.f32 1.0, %v994_v10  ;;  %vm998_vm8 = vcmp.lt.f32.partialorder %v997_v4, 0.0004427343 }
 0x300   : > { %v966_v46 = vmul.f32 0.6931472, %v1592_v33  ;;  %v1594_v44 = vpop.eup %1593 }
 0x301   : > { %v981_v1 = vsel %vm980_vm4, %v978_v42, %v975_v41  ;;  %v982_v57 = vadd.f32 1.0, %v1594_v44  ;;  %v996_v6 = vmul.f32 %v1588_v35, %v995_v3  ;;  %v988_v13 = vand.u32 2147483647, %v1594_v44 }
 0x302   : > { %v1029_v45 = vadd.f32 %v981_v1, %v773_v11  ;;  %v972_v29 = vsel %vm971_vm6, %v969_v50, %v966_v46 }
 0x303   : > { %v1028_v48 = vadd.f32 %v972_v29, %v772_v51  ;;  %1601 = vlog2.f32 %v982_v57  ;;  %vm989_vm10 = vcmp.lt.f32.partialorder %v988_v13, 0.0004427343 }
 0x304   : > { %v1045_v56 = vsel %vm789_vm5, %v2030_v24, %v1029_v45  ;;  %v985_v24 = vmul.f32 -0.5, %v1594_v44 }
 0x305   : > { %1061 = vst [vmem:[%s2110_s25 + $0x58] sm:$0xff] %v1045_v56  ;;  %v1044_v60 = vsel %vm788_vm7, %v2042_v52, %v1028_v48 }
 0x306   : > { %v1596_v61 = vpop.eup %1595  ;;  %1060 = vst [vmem:[%s2110_s25 + $0x50] sm:$0xff] %v1044_v60  ;;  %v986_v12 = vadd.f32 1.0, %v985_v24 }
 0x307   : > { %v1009_v53 = vadd.f32 1.0, %v1596_v61  ;;  %v1598_v63 = vpop.eup %1597  ;;  %v1012_v0 = vmul.f32 -0.5, %v1596_v61  ;;  %v1015_v31 = vand.u32 2147483647, %v1596_v61 }
 0x308   : > { %v1000_v5 = vadd.f32 1.0, %v1598_v63  ;;  %v1003_v16 = vmul.f32 -0.5, %v1598_v63  ;;  %v987_v17 = vmul.f32 %v1594_v44, %v986_v12 }
 0x309   : > { %1603 = vlog2.f32 %v1009_v53  ;;  %v1013_v19 = vadd.f32 1.0, %v1012_v0  ;;  %vm1016_vm12 = vcmp.lt.f32.partialorder %v1015_v31, 0.0004427343 }
 0x30a   : > { %1605 = vlog2.f32 %v1000_v5  ;;  %v1004_v26 = vadd.f32 1.0, %v1003_v16 }
 0x30b   : > { %v1014_v49 = vmul.f32 %v1596_v61, %v1013_v19 }
 0x30c   : > { %v1600_v55 = vpop.eup %1599  ;;  %v1005_v37 = vmul.f32 %v1598_v63, %v1004_v26 }
 0x30d   : > { %v993_v36 = vmul.f32 0.6931472, %v1600_v55 }
 0x30f   : > { %v999_v7 = vsel %vm998_vm8, %v996_v6, %v993_v36 }
 0x310   : > { %v1031_v52 = vadd.f32 %v999_v7, %v775_v58  ;;  %v1602_v39 = vpop.eup %1601 }
 0x311   : > { %v984_v62 = vmul.f32 0.6931472, %v1602_v39 }
 0x312   : > { %v1047_v14 = vsel %vm791_vm9, %v2127_v8, %v1031_v52  ;;  %v1006_v8 = vand.u32 2147483647, %v1598_v63 }
 0x313   : > { %1063 = vst [vmem:[%s2110_s25 + $0x68] sm:$0xff] %v1047_v14  ;;  %v990_v2 = vsel %vm989_vm10, %v987_v17, %v984_v62 }
 0x314   : > { %v1030_v34 = vadd.f32 %v990_v2, %v774_v18  ;;  %vm1007_vm13 = vcmp.lt.f32.partialorder %v1006_v8, 0.0004427343 }
 0x316   : > { %v1604_v20 = vpop.eup %1603  ;;  %v1046_v22 = vsel %vm790_vm11, %v2161_v25, %v1030_v34 }
 0x317   : > { %v1011_v23 = vmul.f32 0.6931472, %v1604_v20  ;;  %v1606_v59 = vpop.eup %1605  ;;  %1062 = vst [vmem:[%s2110_s25 + $0x60] sm:$0xff] %v1046_v22 }
 0x318   : > { %v1002_v43 = vmul.f32 0.6931472, %v1606_v59 }
 0x319   : > { %v1017_v21 = vsel %vm1016_vm12, %v1014_v49, %v1011_v23 }
 0x31a   : > { %v1033_v27 = vadd.f32 %v1017_v21, %v777_v54  ;;  %v1008_v25 = vsel %vm1007_vm13, %v1005_v37, %v1002_v43 }
 0x31b   : > { %v1032_v35 = vadd.f32 %v1008_v25, %v776_v28 }
 0x31c   : > { %v1049_v32 = vsel %vm793_vm14, %v2206_v30, %v1033_v27 }
 0x31d   : > { %1065 = vst [vmem:[%s2110_s25 + $0x78] sm:$0xff] %v1049_v32  ;;  %v1048_v9 = vsel %vm792_vm15, %v2222_v15, %v1032_v35 }
 0x31e   : > { %1064 = vst [vmem:[%s2110_s25 + $0x70] sm:$0xff] %v1048_v9 }
 0x31f   : > { %1674 = shalt.err (!%p1671_p0)
}
 0x320   : > { %s1675_s23 = scalar_lea.hbm %s2276_s10, 2048  ;;  %s1679_s28 = scalar_lea.hbm %s2329_s3, 4096 }
 0x321   : > { %p1676_p5 = scmp.ne.s32.totalorder %s2276_s10, %s1675_s23  ;;  %p1680_p4 = scmp.lt.s32.totalorder %s2276_s10, %s2329_s3 }
 0x322   : > { %p1681_p6 = scmp.lt.s32.totalorder %s1679_s28, %s1675_s23 }
 0x323   : > { %p1677_p2 = pnand %p1676_p5, %p2361_p11 }
 0x324   : > { %p1682_p8 = por %p1681_p6, %p1680_p4 }
 0x325   : > { %p1678_p1 = pneg %p1677_p2 }
 0x327   : > { %p1683_p3 = pnand %p1682_p8, %p1678_p1 }
 0x329   : > { %1686 = shalt.err (!%p1683_p3)
}
 0x32a   : > { %s1736_s22 = smov 128   ;;  %s1737_s25 = smov 8  }
 0x32b   : > { %1488 = dma.vmem_to_hbm [thread:$0]  (%p2361_p11), %s2278_s8, 2048, %s2276_s10, %s1067_s16, %s1736_s22, %s1736_s22, %s1737_s25  }
 0x32c PF: > { %s1095_s4 = sand.u32 1, %s1717_s12   ;;  %p2362_p7 = scmp.ne.s32.totalorder %s2335_s19, 0 }
 0x32d   : > { %p2363_p9 = scmp.ge.s32.totalorder %s1729_s15, 2  ;;  %s1096_s9 = scalar_lea.sflag [#allocation4], %s1095_s4 }
 0x32f   : > { %p1499_p10 = pnand %p2363_p9, %p2362_p7 }
 0x331   : > { %p1500_p12 = pneg %p1499_p10 }
 0x333   : > { %1712 = dma.done.wait (%p1500_p12), %s1096_s9, 2048  }
 0x334   : > { %1714 = vsyncadd (%p1500_p12), %s1096_s9, 4294965248  ;;  %p17_p13 = scmp.ge.s32.totalorder %s1812_s24, 4   ;;  %s2364_s12 = smov %s1721_s13 }
 0x335   : > { %s2365_s13 = smov %s1725_s14  ;;  %s2366_s14 = smov %s1832_s5 }
 0x336   : > { %s2367_s15 = smov %s1812_s24  ;;  %19 = sbr.rel (!%p17_p13) target bundleno = 6 (0x6), region = 85 }
 0x33b   :  { %1101 = vsyncpa [#allocation3], 1 }
 0x33c   :  { %1103 = vsyncpa [#allocation3 + $0x1], 1 }
 0x33d   :  { %1104 = vsyncpa [#allocation6], 1 }
 0x33e   :  { %1105 = vsyncpa [#allocation4], 1 }
 0x33f   :  { %1107 = vsyncpa [#allocation4 + $0x1], 1 }

</bundles_post_ra>
